<compile_context>
chip_gen: v7x
topology: tpu7x:2x2x1
jax: 0.10.0
libtpu: 0.0.40
codegen_flags: <defaults>
</compile_context>

<pallas_src>
import functools
import math

import jax
import jax.numpy as jnp
from jax.experimental import pallas as pl
from jax.experimental.pallas import tpu as pltpu


# ---------------------------------------------------------------------------
# Kernel
# ---------------------------------------------------------------------------
def _glu_expert_kernel(idx_ref,            # scalar-prefetch: expert index (SMEM)
                       x_ref,              # [tile_t, D]
                       wgu_ref,            # [D, 2*tile_h]   (gate | up, pre-T, bf16)
                       wd_ref,             # [tile_h, O]     (pre-T, bf16)
                       bgu_ref,            # [1, 2*tile_h]   (f32)
                       bd_ref,             # [1, O]          (f32)
                       o_ref,              # [tile_t, O]
                       acc_ref):           # VMEM f32 [tile_t, O]
    del idx_ref  # only used by the BlockSpec index_maps to pick the expert
    hi = pl.program_id(1)

    @pl.when(hi == 0)
    def _init():
        # Fold the down-projection bias into the accumulator init.
        acc_ref[...] = jnp.broadcast_to(
            bd_ref[...].astype(jnp.float32), acc_ref.shape)

    # Feed the MXU in the (bf16) weight dtype; accumulation stays f32.
    x = x_ref[...].astype(wgu_ref.dtype)
    # One fused MXU pass: [tile_t, 2*tile_h] = [gate_chunk | up_chunk].
    gu = jnp.dot(x, wgu_ref[...], preferred_element_type=jnp.float32)
    gu = gu + bgu_ref[...].astype(jnp.float32)

    th = wd_ref.shape[0]                 # tile_h (static, lane-aligned)
    gate = gu[:, :th]
    up = gu[:, th:]
    h = (gate * jax.nn.sigmoid(gate)) * up   # SiLU(gate) * up, kept in f32

    # Partial down-projection for this H chunk; single-expression accumulate so
    # Mosaic can exploit in-place MXU accumulation (MRB) on v7x.
    acc_ref[...] += jnp.dot(h.astype(wd_ref.dtype), wd_ref[...],
                            preferred_element_type=jnp.float32)

    @pl.when(hi == pl.num_programs(1) - 1)
    def _finalize():
        o_ref[...] = acc_ref[...].astype(o_ref.dtype)


# ---------------------------------------------------------------------------
# Tiling helpers (per-generation VMEM aware) & one-time parameter packing
# ---------------------------------------------------------------------------
@functools.lru_cache(maxsize=1)
def _vmem_capacity_bytes():
    """Physical per-core VMEM; conservative 64 MiB fallback (v7x-safe)."""
    try:
        info = pltpu.get_tpu_info()
        cap = getattr(info, "vmem_capacity_bytes", None)
        if cap:
            return int(cap)
    except Exception:
        pass
    return 64 << 20


def _pick_tile(full, target, align):
    """Largest divisor of `full` that is a multiple of `align` and <= target.
    Falls back to the largest divisor <= target, then to `full`."""
    if full <= target:
        return full
    best = None
    for t in range(min(target, full), 0, -1):
        if full % t == 0:
            if t % align == 0:
                return t
            if best is None:
                best = t
    return best if best is not None else full


def choose_tiles(T, H, D, O, *, x_itemsize=4, w_itemsize=2, b_itemsize=4,
                 out_itemsize=4, vmem_budget_bytes=None):
    """Pick (tile_t, tile_h) from the actual chip's VMEM.

    Accounts for double-buffered x / weight / bias / output tiles plus the f32
    accumulator.  Prefers the weights-resident mode (tile_h == H) so the
    expert's weight slab is DMA'd from HBM exactly once; otherwise picks the
    largest 128-aligned tile_h that fits."""
    if vmem_budget_bytes is None:
        vmem_budget_bytes = int(0.70 * _vmem_capacity_bytes())

    # Double-buffered weight/bias bytes per unit of tile_h.
    per_h = 2 * (2 * D + O) * w_itemsize + 4 * b_itemsize

    def fixed_bytes(tt):                 # tile_t-dependent (tile_h-independent)
        return (2 * tt * D * x_itemsize          # x, double-buffered
                + 2 * tt * O * out_itemsize      # out, double-buffered
                + tt * O * 4                     # f32 accumulator scratch
                + 2 * O * b_itemsize)            # bd, double-buffered

    # Token tile: as large as practical (<= 1024), 256-aligned when possible
    # (full MXU M-dim on v6e/v7x); bigger tile_t => fewer weight re-streams.
    tile_t = _pick_tile(T, min(T, 1024), 256)
    min_h = min(H, 128)
    while tile_t > 16 and vmem_budget_bytes - fixed_bytes(tile_t) < per_h * min_h:
        nt = _pick_tile(T, max(16, tile_t // 2), 16)
        if nt == tile_t:
            break
        tile_t = nt

    remaining = vmem_budget_bytes - fixed_bytes(tile_t)
    if per_h * H <= remaining:
        return tile_t, H                 # weights-resident: h grid extent == 1
    tile_h = _pick_tile(H, max(128, int(remaining) // per_h), 128)
    return tile_t, tile_h


def pack_glu_expert_params(wg, wu, wd, bg, bu, bd, tile_h, *,
                           w_dtype=jnp.bfloat16):
    """Pre-transpose, fuse and (bf16-)pack expert params (one-time plumbing).

    wg/wu: [E, H, D] -> wgu: [E, D, 2*H] interleaved per tile_h chunk (w_dtype)
    wd:    [E, O, H] -> wd_t: [E, H, O]                              (w_dtype)
    bg/bu: [E, H]    -> bgu:  [E, 1, 2*H] (matching interleave, f32)
    bd:    [E, O]    -> bd2:  [E, 1, O]   (f32)

    Returns (wgu, wd_t, bgu, bd2, tile_h); the trailing tile_h must match the
    kernel's tile_h (asserted in the forward) -- the interleave is baked in.
    """
    E, H, D = wg.shape
    O = wd.shape[1]
    assert H % tile_h == 0
    nH = H // tile_h

    wg_t = jnp.swapaxes(wg, 1, 2).astype(w_dtype)          # [E, D, H]
    wu_t = jnp.swapaxes(wu, 1, 2).astype(w_dtype)          # [E, D, H]
    wgu = jnp.concatenate(
        [wg_t.reshape(E, D, nH, 1, tile_h),
         wu_t.reshape(E, D, nH, 1, tile_h)], axis=3).reshape(E, D, 2 * H)

    bgu = jnp.concatenate(
        [bg.reshape(E, nH, 1, tile_h).astype(jnp.float32),
         bu.reshape(E, nH, 1, tile_h).astype(jnp.float32)],
        axis=2).reshape(E, 1, 2 * H)

    wd_t = jnp.swapaxes(wd, 1, 2).astype(w_dtype)          # [E, H, O]
    bd2 = bd.reshape(E, 1, O).astype(jnp.float32)
    return wgu, wd_t, bgu, bd2, tile_h


# ---------------------------------------------------------------------------
# Forward
# ---------------------------------------------------------------------------
@functools.partial(jax.jit, static_argnames=("tile_t", "tile_h", "pack_tile_h"))
def linear_glu_experts_forward(x, expert_idx, wgu, wd_t, bgu, bd2,
                               *, tile_t, tile_h, pack_tile_h):
    """x: [T, D]; wgu: [E, D, 2H]; wd_t: [E, H, O]; bgu: [E, 1, 2H]; bd2: [E, 1, O]."""
    T, D = x.shape
    E, _, H2 = wgu.shape
    H = H2 // 2
    O = wd_t.shape[2]

    # The gate|up interleave is baked at packing time; a mismatched tile_h
    # would silently compute garbage.
    assert tile_h == pack_tile_h, (tile_h, pack_tile_h)
    assert T % tile_t == 0 and (tile_t % 8 == 0 or tile_t == T)
    assert H % tile_h == 0 and (tile_h % 64 == 0 or tile_h == H)
    n_t = T // tile_t
    n_h = H // tile_h

    idx = jnp.asarray(expert_idx, jnp.int32).reshape((1,))

    grid_spec = pltpu.PrefetchScalarGridSpec(
        num_scalar_prefetch=1,
        grid=(n_t, n_h),
        in_specs=[
            # activations: tiled over tokens, full D on lanes
            pl.BlockSpec((tile_t, D), lambda t, h, idx: (t, 0)),
            # fused gate|up weights: [D, 2*tile_h] chunk of the selected expert
            # (constant block index when n_h == 1 -> DMA'd once, stays resident)
            pl.BlockSpec((None, D, 2 * tile_h), lambda t, h, idx: (idx[0], 0, h)),
            # down-proj weights: [tile_h, O] chunk of the selected expert
            pl.BlockSpec((None, tile_h, O), lambda t, h, idx: (idx[0], h, 0)),
            # fused gate|up bias chunk
            pl.BlockSpec((None, 1, 2 * tile_h), lambda t, h, idx: (idx[0], 0, h)),
            # down-proj bias
            pl.BlockSpec((None, 1, O), lambda t, h, idx: (idx[0], 0, 0)),
        ],
        out_specs=pl.BlockSpec((tile_t, O), lambda t, h, idx: (t, 0)),
        scratch_shapes=[pltpu.VMEM((tile_t, O), jnp.float32)],
    )

    x_item = jnp.dtype(x.dtype).itemsize
    w_item = jnp.dtype(wgu.dtype).itemsize
    b_item = jnp.dtype(bgu.dtype).itemsize
    out_item = x_item

    # VMEM actually planned for this launch (double-buffered ins/outs + acc);
    # derive the scoped limit from it, capped well below physical VMEM
    # (v7x = 64 MiB physical, v5e/v6e = 128 MiB).
    planned = (2 * tile_t * D * x_item
               + 2 * (D * 2 * tile_h + tile_h * O) * w_item
               + 2 * (2 * tile_h + O) * b_item
               + 2 * tile_t * O * out_item
               + tile_t * O * 4)
    cap = _vmem_capacity_bytes()
    vmem_limit = int(min(int(0.90 * cap), max(32 << 20, planned + (8 << 20))))

    # HBM traffic: weights are re-streamed once per token tile when the H axis
    # is tiled; streamed exactly once in the weights-resident (n_h == 1) mode.
    param_bytes = (D * 2 * H + H * O) * w_item + (2 * H + O) * b_item
    weight_stream_factor = 1 if n_h == 1 else n_t
    bytes_accessed = (x.size * x_item
                      + weight_stream_factor * param_bytes
                      + T * O * out_item)
    flops = 2 * T * (D * 2 * H + H * O)

    return pl.pallas_call(
        _glu_expert_kernel,
        out_shape=jax.ShapeDtypeStruct((T, O), x.dtype),
        grid_spec=grid_spec,
        compiler_params=pltpu.CompilerParams(
            dimension_semantics=("parallel", "arbitrary"),
            vmem_limit_bytes=vmem_limit,
        ),
        cost_estimate=pl.CostEstimate(
            flops=flops, transcendentals=T * H, bytes_accessed=bytes_accessed),
    )(idx, x, wgu, wd_t, bgu, bd2)


# ---------------------------------------------------------------------------
# Reference & init helpers
# ---------------------------------------------------------------------------
def _silu(v):
    return v * jax.nn.sigmoid(v)


def _reference(x, i, wg, wu, wd, bg, bu, bd):
    gate = _silu(x @ wg[i].T + bg[i])
    up = x @ wu[i].T + bu[i]
    return (gate * up) @ wd[i].T + bd[i]


def _kaiming_uniform_like(key, shape):
    # kaiming_uniform_(a=sqrt(5)) reduces to U(-1/sqrt(fan_in), 1/sqrt(fan_in))
    fan_in = shape[-1]
    bound = 1.0 / math.sqrt(fan_in)
    return jax.random.uniform(key, shape, jnp.float32, -bound, bound)


# ---------------------------------------------------------------------------
# Demo / self-test
# ---------------------------------------------------------------------------
if __name__ == "__main__":
    # Module config (small but exercises both code paths).
    in_features = 128
    hidden_features = 512
    out_features = 128
    num_experts = 2
    size_per_expert = hidden_features // num_experts   # 256 per expert
    batch, seq = 2, 64
    tokens = batch * seq                                # 128 tokens

    key = jax.random.PRNGKey(0)
    keys = jax.random.split(key, 7)

    # Stacked expert parameters (deterministic init matching reset_parameters).
    wg = _kaiming_uniform_like(keys[0], (num_experts, size_per_expert, in_features))
    wu = _kaiming_uniform_like(keys[1], (num_experts, size_per_expert, in_features))
    wd = _kaiming_uniform_like(keys[2], (num_experts, out_features, size_per_expert))
    bg_bound = 1.0 / math.sqrt(in_features)
    bd_bound = 1.0 / math.sqrt(size_per_expert)
    bg = jax.random.uniform(keys[3], (num_experts, size_per_expert), jnp.float32,
                            -bg_bound, bg_bound)
    bu = jax.random.uniform(keys[4], (num_experts, size_per_expert), jnp.float32,
                            -bg_bound, bg_bound)
    bd = jax.random.uniform(keys[5], (num_experts, out_features), jnp.float32,
                            -bd_bound, bd_bound)

    # Input: [batch, seq, in_features] flattened to [tokens, in_features].
    x = jax.random.normal(keys[6], (batch, seq, in_features), jnp.float32)
    x2d = x.reshape(tokens, in_features)

    expert_i = 1
    ref = _reference(x2d, expert_i, wg, wu, wd, bg, bu, bd)

    # bf16 weights in the MXU + f32 accumulation => loose-ish tolerance vs the
    # f32 reference.
    ATOL = RTOL = 4e-2

    # --- Path 1: auto tiling (weights-resident at these shapes) -------------
    tile_t, tile_h = choose_tiles(tokens, size_per_expert, in_features,
                                  out_features,
                                  x_itemsize=x2d.dtype.itemsize,
                                  w_itemsize=2, out_itemsize=x2d.dtype.itemsize)
    wgu, wd_t, bgu, bd2, p_th = pack_glu_expert_params(wg, wu, wd, bg, bu, bd,
                                                       tile_h)
    out = linear_glu_experts_forward(x2d, expert_i, wgu, wd_t, bgu, bd2,
                                     tile_t=tile_t, tile_h=tile_h,
                                     pack_tile_h=p_th)
    out = jax.block_until_ready(out)
    assert out.shape == (tokens, out_features)
    err = float(jnp.max(jnp.abs(out - ref)))
    assert jnp.allclose(out, ref, atol=ATOL, rtol=RTOL), \
        f"resident-mode mismatch vs reference (max abs err {err})"

    # --- Path 2: forced tiled-H streaming mode (exercises accumulator) ------
    tile_t2, tile_h2 = 64, 128
    wgu2, wd_t2, bgu2, bd22, p_th2 = pack_glu_expert_params(
        wg, wu, wd, bg, bu, bd, tile_h2)
    out2 = linear_glu_experts_forward(x2d, expert_i, wgu2, wd_t2, bgu2, bd22,
                                      tile_t=tile_t2, tile_h=tile_h2,
                                      pack_tile_h=p_th2)
    out2 = jax.block_until_ready(out2)
    err2 = float(jnp.max(jnp.abs(out2 - ref)))
    assert jnp.allclose(out2, ref, atol=ATOL, rtol=RTOL), \
        f"tiled-mode mismatch vs reference (max abs err {err2})"

    # Reshape back to [batch, seq, out_features] like the torch module returns.
    _ = out.reshape(batch, seq, out_features)

    print("KERNEL_OK")
</pallas_src>

<mosaic_0001>
module attributes {stable_mosaic.version = 11 : i64} {
  func.func @_glu_expert_kernel(%arg0: i32, %arg1: i32, %arg2: memref<1xi32, #tpu.memory_space<smem>>, %arg3: memref<128x128xf32, #tpu.memory_space<vmem>>, %arg4: memref<1x128x512xbf16, #tpu.memory_space<vmem>>, %arg5: memref<1x256x128xbf16, #tpu.memory_space<vmem>>, %arg6: memref<1x1x512xf32, #tpu.memory_space<vmem>>, %arg7: memref<1x1x128xf32, #tpu.memory_space<vmem>>, %arg8: memref<128x128xf32, #tpu.memory_space<vmem>>, %arg9: memref<128x128xf32, #tpu.memory_space<vmem>>) attributes {dimension_semantics = [#tpu.dimension_semantics<parallel>, #tpu.dimension_semantics<arbitrary>], iteration_bounds = array<i64: 1, 1>, scalar_prefetch = 1 : i64, scratch_operands = 1 : i64, tpu.core_type = #tpu.core_type<tc>, window_params = [{transform_indices = @transform_0, window_bounds = array<i64: 128, 128>}, {transform_indices = @transform_1, window_bounds = array<i64: 1, 128, 512>}, {transform_indices = @transform_2, window_bounds = array<i64: 1, 256, 128>}, {transform_indices = @transform_3, window_bounds = array<i64: 1, 1, 512>}, {transform_indices = @transform_4, window_bounds = array<i64: 1, 1, 128>}, {transform_indices = @transform_5, window_bounds = array<i64: 128, 128>}]} {
    %c0_i32 = arith.constant 0 : i32
    %0 = arith.cmpi eq, %arg1, %c0_i32 : i32
    %1 = arith.extui %0 : i1 to i32
    %c0_i32_0 = arith.constant 0 : i32
    %2 = arith.cmpi ne, %1, %c0_i32_0 : i32
    scf.if %2 {
      %c0_19 = arith.constant 0 : index
      %c0_20 = arith.constant 0 : index
      %c0_21 = arith.constant 0 : index
      %31 = vector.load %arg7[%c0_19, %c0_20, %c0_21] : memref<1x1x128xf32, #tpu.memory_space<vmem>>, vector<1x1x128xf32>
      %32 = vector.shape_cast %31 : vector<1x1x128xf32> to vector<1x128xf32>
      %33 = vector.shape_cast %32 : vector<1x128xf32> to vector<1x128xf32>
      %34 = vector.broadcast %33 : vector<1x128xf32> to vector<128x128xf32>
      %c0_22 = arith.constant 0 : index
      %c0_23 = arith.constant 0 : index
      %35 = vector.load %arg9[%c0_22, %c0_23] : memref<128x128xf32, #tpu.memory_space<vmem>>, vector<128x128xf32>
      tpu.vector_store %arg9[%c0_22, %c0_23], %34 {strides = array<i32>} : memref<128x128xf32, #tpu.memory_space<vmem>>, vector<128x128xf32>,
    } else {
    }
    %c0 = arith.constant 0 : index
    %c0_1 = arith.constant 0 : index
    %3 = vector.load %arg3[%c0, %c0_1] : memref<128x128xf32, #tpu.memory_space<vmem>>, vector<128x128xf32>
    %4 = arith.truncf %3 : vector<128x128xf32> to vector<128x128xbf16>
    %c0_2 = arith.constant 0 : index
    %c0_3 = arith.constant 0 : index
    %c0_4 = arith.constant 0 : index
    %5 = vector.load %arg4[%c0_2, %c0_3, %c0_4] : memref<1x128x512xbf16, #tpu.memory_space<vmem>>, vector<1x128x512xbf16>
    %6 = vector.shape_cast %5 : vector<1x128x512xbf16> to vector<128x512xbf16>
    %cst = arith.constant dense<0.000000e+00> : vector<128x512xf32>
    %7 = tpu.matmul %4, %6, %cst {dimension_numbers = #tpu.dot_dimension_numbers<[1], [0], [0], [1], [0, 0, 1, 1], [], []>} : vector<128x128xbf16>, vector<128x512xbf16>, vector<128x512xf32> -> vector<128x512xf32>
    %c0_5 = arith.constant 0 : index
    %c0_6 = arith.constant 0 : index
    %c0_7 = arith.constant 0 : index
    %8 = vector.load %arg6[%c0_5, %c0_6, %c0_7] : memref<1x1x512xf32, #tpu.memory_space<vmem>>, vector<1x1x512xf32>
    %9 = vector.shape_cast %8 : vector<1x1x512xf32> to vector<1x512xf32>
    %10 = vector.broadcast %9 : vector<1x512xf32> to vector<128x512xf32>
    %11 = arith.addf %7, %10 : vector<128x512xf32>
    %12 = vector.extract_strided_slice %11 {offsets = [0, 0], sizes = [128, 256], strides = [1, 1]} : vector<128x512xf32> to vector<128x256xf32>
    %13 = vector.extract_strided_slice %11 {offsets = [0, 256], sizes = [128, 256], strides = [1, 1]} : vector<128x512xf32> to vector<128x256xf32>
    %14 = arith.negf %12 : vector<128x256xf32>
    %15 = math.exp %14 : vector<128x256xf32>
    %cst_8 = arith.constant 1.000000e+00 : f32
    %16 = vector.broadcast %cst_8 : f32 to vector<128x256xf32>
    %17 = arith.addf %16, %15 : vector<128x256xf32>
    %18 = arith.divf %16, %17 : vector<128x256xf32>
    %19 = arith.mulf %12, %18 : vector<128x256xf32>
    %20 = arith.mulf %19, %13 : vector<128x256xf32>
    %c0_9 = arith.constant 0 : index
    %c0_10 = arith.constant 0 : index
    %21 = vector.load %arg9[%c0_9, %c0_10] : memref<128x128xf32, #tpu.memory_space<vmem>>, vector<128x128xf32>
    %22 = arith.truncf %20 : vector<128x256xf32> to vector<128x256xbf16>
    %c0_11 = arith.constant 0 : index
    %c0_12 = arith.constant 0 : index
    %c0_13 = arith.constant 0 : index
    %23 = vector.load %arg5[%c0_11, %c0_12, %c0_13] : memref<1x256x128xbf16, #tpu.memory_space<vmem>>, vector<1x256x128xbf16>
    %24 = vector.shape_cast %23 : vector<1x256x128xbf16> to vector<256x128xbf16>
    %cst_14 = arith.constant dense<0.000000e+00> : vector<128x128xf32>
    %25 = tpu.matmul %22, %24, %cst_14 {dimension_numbers = #tpu.dot_dimension_numbers<[1], [0], [0], [1], [0, 0, 1, 1], [], []>} : vector<128x256xbf16>, vector<256x128xbf16>, vector<128x128xf32> -> vector<128x128xf32>
    %26 = arith.addf %21, %25 : vector<128x128xf32>
    %c0_15 = arith.constant 0 : index
    %c0_16 = arith.constant 0 : index
    %27 = vector.load %arg9[%c0_15, %c0_16] : memref<128x128xf32, #tpu.memory_space<vmem>>, vector<128x128xf32>
    tpu.vector_store %arg9[%c0_15, %c0_16], %26 {strides = array<i32>} : memref<128x128xf32, #tpu.memory_space<vmem>>, vector<128x128xf32>,
    %c0_i32_17 = arith.constant 0 : i32
    %28 = arith.cmpi eq, %arg1, %c0_i32_17 : i32
    %29 = arith.extui %28 : i1 to i32
    %c0_i32_18 = arith.constant 0 : i32
    %30 = arith.cmpi ne, %29, %c0_i32_18 : i32
    scf.if %30 {
      %c0_19 = arith.constant 0 : index
      %c0_20 = arith.constant 0 : index
      %31 = vector.load %arg9[%c0_19, %c0_20] : memref<128x128xf32, #tpu.memory_space<vmem>>, vector<128x128xf32>
      %c0_21 = arith.constant 0 : index
      %c0_22 = arith.constant 0 : index
      %32 = vector.load %arg8[%c0_21, %c0_22] : memref<128x128xf32, #tpu.memory_space<vmem>>, vector<128x128xf32>
      tpu.vector_store %arg8[%c0_21, %c0_22], %31 {strides = array<i32>} : memref<128x128xf32, #tpu.memory_space<vmem>>, vector<128x128xf32>,
    } else {
    }
    return
  }
  func.func @transform_0(%arg0: i32, %arg1: i32, %arg2: memref<1xi32, #tpu.memory_space<smem>>) -> (i32, i32) {
    %c0_i32 = arith.constant 0 : i32
    %c0_i32_0 = arith.constant 0 : i32
    return %arg0, %c0_i32 : i32, i32
  }
  func.func @transform_1(%arg0: i32, %arg1: i32, %arg2: memref<1xi32, #tpu.memory_space<smem>>) -> (i32, i32, i32) {
    %c0 = arith.constant 0 : index
    %0 = memref.load %arg2[%c0] : memref<1xi32, #tpu.memory_space<smem>>
    %c0_i32 = arith.constant 0 : i32
    %c0_i32_0 = arith.constant 0 : i32
    return %0, %c0_i32, %arg1 : i32, i32, i32
  }
  func.func @transform_2(%arg0: i32, %arg1: i32, %arg2: memref<1xi32, #tpu.memory_space<smem>>) -> (i32, i32, i32) {
    %c0 = arith.constant 0 : index
    %0 = memref.load %arg2[%c0] : memref<1xi32, #tpu.memory_space<smem>>
    %c0_i32 = arith.constant 0 : i32
    %c0_i32_0 = arith.constant 0 : i32
    return %0, %arg1, %c0_i32 : i32, i32, i32
  }
  func.func @transform_3(%arg0: i32, %arg1: i32, %arg2: memref<1xi32, #tpu.memory_space<smem>>) -> (i32, i32, i32) {
    %c0 = arith.constant 0 : index
    %0 = memref.load %arg2[%c0] : memref<1xi32, #tpu.memory_space<smem>>
    %c0_i32 = arith.constant 0 : i32
    %c0_i32_0 = arith.constant 0 : i32
    return %0, %c0_i32, %arg1 : i32, i32, i32
  }
  func.func @transform_4(%arg0: i32, %arg1: i32, %arg2: memref<1xi32, #tpu.memory_space<smem>>) -> (i32, i32, i32) {
    %c0 = arith.constant 0 : index
    %0 = memref.load %arg2[%c0] : memref<1xi32, #tpu.memory_space<smem>>
    %c0_i32 = arith.constant 0 : i32
    %c0_i32_0 = arith.constant 0 : i32
    %c0_i32_1 = arith.constant 0 : i32
    return %0, %c0_i32, %c0_i32_0 : i32, i32, i32
  }
  func.func @transform_5(%arg0: i32, %arg1: i32, %arg2: memref<1xi32, #tpu.memory_space<smem>>) -> (i32, i32) {
    %c0_i32 = arith.constant 0 : i32
    %c0_i32_0 = arith.constant 0 : i32
    return %arg0, %c0_i32 : i32, i32
  }
}

</mosaic_0001>

<bundles_post_ra>
// kernel: linear_glu_experts_forward.1
= control target key start
LH: loop header
LB: loop body
LE: loop exit
PB: predicated region body
PF: predicated region fallthrough
CT: control target
= control target key end

     0   :  { %12 = vsyncpa [#allocation6], 0  ;;  %s2131_s0 = inlined_call_operand.<no memory space> [shape: s32[1], index: 0, kind: input, shape index: {}]   ;;  %s2132_s1 = inlined_call_operand.hbm [shape: f32[128,128], index: 1, kind: input, shape index: {}]   ;;  %s2133_s2 = inlined_call_operand.hbm [shape: bf16[2,128,512], index: 2, kind: input, shape index: {}]   ;;  %s2134_s3 = inlined_call_operand.hbm [shape: bf16[2,256,128], index: 3, kind: input, shape index: {}]   ;;  %s2135_s4 = inlined_call_operand.vmem [shape: f32[2,1,512], index: 4, kind: input, shape index: {}]   ;;  %s2136_s5 = inlined_call_operand.vmem [shape: f32[2,1,128], index: 5, kind: input, shape index: {}]   ;;  %s2137_s6 = inlined_call_operand.hbm [shape: f32[128,128], index: 6, kind: output, shape index: {}]  }
   0x1   :  { %13 = vsyncpa [#allocation9], 0  ;;  %s1294_s23 = sshll.u32 %s2131_s0, 12 }
   0x2   :  { %14 = vsyncpa [#allocation7], 0  ;;  %s35_s26 = scalar_lea.hbm %s2133_s2, %s1294_s23  ;;  %s1677_s27 = smov [#allocation8]  }
   0x3   :  { %s36_s28 = sshll.u32 %s1677_s27, 4  ;;  %s1579_s29 = scalar_lea.hbm %s35_s26, 4096  ;;  %s37_s28 = int_to_ptr.vmem [resolvable:$true] %s36_s28 }
   0x4   :  { %p1580_p0 = scmp.ne.s32.totalorder %s35_s26, %s1579_s29  ;;  %s1581_s8 = scalar_lea.hbm %s2133_s2, 8192 }
   0x5   :  { %p1582_p1 = scmp.lt.u32.totalorder %s35_s26, %s2133_s2  ;;  %p1583_p2 = scmp.lt.u32.totalorder %s1581_s8, %s1579_s29 }
   0x6   :  { %p1585_p4 = scmp.lt.u32.totalorder %s1579_s29, %s35_s26 }
   0x7   :  { %p1584_p3 = por %p1583_p2, %p1582_p1 }
   0x9   :  { %p1586_p5 = por %p1585_p4, %p1584_p3 }
   0xb   :  { %p1587_p6 = pnand %p1586_p5, %p1580_p0 }
   0xd   :  { %1590 = shalt.err (!%p1587_p6)
}
   0xe   :  { %s1591_s11 = scalar_lea.vmem %s37_s28, 4096  ;;  %p1596_p8 = scmp.lt.s32.totalorder %s37_s28, %s37_s28 }
   0xf   :  { %p1592_p7 = scmp.ne.s32.totalorder %s37_s28, %s1591_s11  ;;  %p1597_p9 = scmp.lt.s32.totalorder %s1591_s11, %s1591_s11 }
  0x11   :  { %p1598_p10 = por %p1597_p9, %p1596_p8 }
  0x13   :  { %p1599_p11 = pnand %p1598_p10, %p1592_p7 }
  0x15   :  { %1602 = shalt.err (!%p1599_p11)
}
  0x16   :  { %s1678_s12 = smov 256   ;;  %s1679_s13 = smov 16  }
  0x17   :  { %42 = dma.hbm_to_vmem [thread:$0]  %s35_s26, 4096, %s37_s28, [#allocation9], %s1678_s12, %s1678_s12, %s1679_s13  }
  0x18   :  { %s1680_s14 = smov [#allocation5]   ;;  %s1603_s17 = scalar_lea.hbm %s2132_s1, 2048 }
  0x19   :  { %s20_s15 = sshll.u32 %s1680_s14, 4  ;;  %p1604_p12 = scmp.ne.s32.totalorder %s2132_s1, %s1603_s17  ;;  %s21_s15 = int_to_ptr.vmem [resolvable:$true] %s20_s15 }
  0x1a   :  { %p1607_p13 = scmp.lt.u32.totalorder %s1603_s17, %s2132_s1 }
  0x1c   :  { %p1609_p0 = pnand %p1607_p13, %p1604_p12 }
  0x1e   :  { %1612 = shalt.err (!%p1609_p0)
}
  0x1f   :  { %s1613_s22 = scalar_lea.vmem %s21_s15, 2048  ;;  %p1618_p2 = scmp.lt.s32.totalorder %s21_s15, %s21_s15 }
  0x20   :  { %p1614_p1 = scmp.ne.s32.totalorder %s21_s15, %s1613_s22  ;;  %p1619_p3 = scmp.lt.s32.totalorder %s1613_s22, %s1613_s22 }
  0x22   :  { %p1620_p4 = por %p1619_p3, %p1618_p2 }
  0x24   :  { %p1621_p5 = pnand %p1620_p4, %p1614_p1 }
  0x26   :  { %1624 = shalt.err (!%p1621_p5)
}
  0x27   :  { %s1681_s23 = smov 128   ;;  %s1682_s24 = smov 8  }
  0x28   :  { %26 = dma.hbm_to_vmem [thread:$0]  %s2132_s1, 2048, %s21_s15, [#allocation6], %s1681_s23, %s1681_s23, %s1682_s24  }
  0x29   :  { %s1295_s29 = sshll.u32 %s2131_s0, 11  ;;  %s1683_s9 = smov [#allocation10]  }
  0x2a   :  { %s51_s8 = scalar_lea.hbm %s2134_s3, %s1295_s29  ;;  %s52_s10 = sshll.u32 %s1683_s9, 4  ;;  %s53_s10 = int_to_ptr.vmem [resolvable:$true] %s52_s10 }
  0x2b   :  { %s1625_s11 = scalar_lea.hbm %s51_s8, 2048  ;;  %s1627_s14 = scalar_lea.hbm %s2134_s3, 4096 }
  0x2c   :  { %p1626_p6 = scmp.ne.s32.totalorder %s51_s8, %s1625_s11  ;;  %p1628_p7 = scmp.lt.u32.totalorder %s51_s8, %s2134_s3 }
  0x2d   :  { %p1629_p8 = scmp.lt.u32.totalorder %s1627_s14, %s1625_s11  ;;  %p1631_p10 = scmp.lt.u32.totalorder %s1625_s11, %s51_s8 }
  0x2f   :  { %p1630_p9 = por %p1629_p8, %p1628_p7 }
  0x31   :  { %p1632_p11 = por %p1631_p10, %p1630_p9 }
  0x33   :  { %p1633_p12 = pnand %p1632_p11, %p1626_p6 }
  0x35   :  { %1636 = shalt.err (!%p1633_p12)
}
  0x36   :  { %s1637_s1 = scalar_lea.vmem %s53_s10, 2048  ;;  %p1642_p0 = scmp.lt.s32.totalorder %s53_s10, %s53_s10 }
  0x37   :  { %p1638_p13 = scmp.ne.s32.totalorder %s53_s10, %s1637_s1  ;;  %p1643_p1 = scmp.lt.s32.totalorder %s1637_s1, %s1637_s1 }
  0x39   :  { %p1644_p2 = por %p1643_p1, %p1642_p0 }
  0x3b   :  { %p1645_p3 = pnand %p1644_p2, %p1638_p13 }
  0x3d   :  { %1648 = shalt.err (!%p1645_p3)
}
  0x3e   :  { %s1684_s15 = smov 64   ;;  %s1685_s17 = smov 4  }
  0x3f   :  { %58 = dma.hbm_to_vmem [thread:$0]  %s51_s8, 2048, %s53_s10, [#allocation9], %s1684_s15, %s1684_s15, %s1685_s17  }
  0x40   :  { %1671 = dma.done.wait [#allocation6], 2048  }
  0x41   :  { %1672 = vsyncadd [#allocation6], 4294965248 }
  0x42   :  { %1673 = dma.done.wait [#allocation9], 6144  }
  0x43   :  { %1674 = vsyncadd [#allocation9], 4294961152  ;;  %v1686_v0 = vmov 0   ;;  %v1387_v1 = vld [vmem:[#allocation8 + $0x4] ss:$16 sps:$4 sm:$0xff]   ;;  %v134_v18 = vld [vmem:[#allocation5 + $0x8] sm:$0xff] }
  0x44   :  { %403 = vmatprep.mubr.bf16.mxu0 %v1686_v0  ;;  %443 = vmatprep.mubr.bf16.mxu1 %v1686_v0  ;;  %v1389_v2 = vld [vmem:[#allocation8] ss:$16 sps:$4 sm:$0xff]   ;;  %v1390_v3 = vld [vmem:[#allocation8 + $0x24] ss:$16 sps:$4 sm:$0xff]   ;;  %v142_v20 = vld [vmem:[#allocation5 + $0x48] sm:$0xff]  ;;  %p95_p4 = scmp.lt.s32.totalorder %s2131_s0, 1 }
  0x45   :  { %371 = vmatprep.subr.bf16.mxu0 %v1387_v1  ;;  %1360 = vmatprep.subr.bf16.mxu1 %v1387_v1  ;;  %v1392_v4 = vld [vmem:[#allocation8 + $0x20] ss:$16 sps:$4 sm:$0xff]   ;;  %v1393_v5 = vld [vmem:[#allocation8 + $0x44] ss:$16 sps:$4 sm:$0xff]   ;;  %v1413_v21 = vld [vmem:[#allocation8 + $0xc] ss:$16 sps:$4 sm:$0xff]  }
  0x46   :  { %372 = vmatpush1.bf16.msra.mxu0 %v1389_v2  ;;  %1368 = vmatpush1.bf16.msra.mxu1 %v1389_v2  ;;  %v1395_v6 = vld [vmem:[#allocation8 + $0x40] ss:$16 sps:$4 sm:$0xff]   ;;  %v1396_v7 = vld [vmem:[#allocation8 + $0x64] ss:$16 sps:$4 sm:$0xff]   ;;  %v1411_v22 = vld [vmem:[#allocation8 + $0x8] ss:$16 sps:$4 sm:$0xff]  }
  0x47   :  { %373 = vmatprep.subr.bf16.mxu0 %v1390_v3  ;;  %1361 = vmatprep.subr.bf16.mxu1 %v1390_v3  ;;  %v1398_v8 = vld [vmem:[#allocation8 + $0x60] ss:$16 sps:$4 sm:$0xff]   ;;  %v1399_v9 = vld [vmem:[#allocation8 + $0x84] ss:$16 sps:$4 sm:$0xff]   ;;  %v1416_v25 = vld [vmem:[#allocation8 + $0x2c] ss:$16 sps:$4 sm:$0xff]  }
  0x48   :  { %v1401_v10 = vld [vmem:[#allocation8 + $0x80] ss:$16 sps:$4 sm:$0xff]   ;;  %v1402_v11 = vld [vmem:[#allocation8 + $0xa4] ss:$16 sps:$4 sm:$0xff]   ;;  %v1414_v26 = vld [vmem:[#allocation8 + $0x28] ss:$16 sps:$4 sm:$0xff]  }
  0x49   :  { %v1404_v12 = vld [vmem:[#allocation8 + $0xa0] ss:$16 sps:$4 sm:$0xff]   ;;  %v1405_v13 = vld [vmem:[#allocation8 + $0xc4] ss:$16 sps:$4 sm:$0xff]   ;;  %v136_v28 = vld [vmem:[#allocation5 + $0x18] sm:$0xff]  ;;  %s2139_s0 = smov (!%p95_p4, %s2131_s0), 1 }
  0x4a   :  { %374 = vmatpush1.bf16.msra.mxu0 %v1392_v4  ;;  %1369 = vmatpush1.bf16.msra.mxu1 %v1392_v4  ;;  %v1407_v14 = vld [vmem:[#allocation8 + $0xc0] ss:$16 sps:$4 sm:$0xff]   ;;  %v1408_v15 = vld [vmem:[#allocation8 + $0xe4] ss:$16 sps:$4 sm:$0xff]   ;;  %v144_v30 = vld [vmem:[#allocation5 + $0x58] sm:$0xff]  ;;  %s1212_s21 = sshll.u32 %s2139_s0, 2  ;;  %s103_s28 = scalar_lea.vmem %s2136_s5, %s2139_s0 }
  0x4b   :  { %375 = vmatprep.subr.bf16.mxu0 %v1393_v5  ;;  %1362 = vmatprep.subr.bf16.mxu1 %v1393_v5  ;;  %v1410_v16 = vld [vmem:[#allocation8 + $0xe0] ss:$16 sps:$4 sm:$0xff]   ;;  %v1419_v31 = vld [vmem:[#allocation8 + $0x4c] ss:$16 sps:$4 sm:$0xff]   ;;  %v1417_v34 = vld [vmem:[#allocation8 + $0x48] ss:$16 sps:$4 sm:$0xff]   ;;  %s98_s26 = scalar_lea.vmem %s2135_s4, %s1212_s21 }
  0x4c   :  { %v133_v17 = vld [vmem:[#allocation5] sm:$0xff]  ;;  %v135_v27 = vld [vmem:[#allocation5 + $0x10] sm:$0xff]  ;;  %v1422_v35 = vld [vmem:[#allocation8 + $0x6c] ss:$16 sps:$4 sm:$0xff]   ;;  %s1687_s0 = smov [#allocation11]  }
  0x4d   :  { %v141_v19 = vld [vmem:[#allocation5 + $0x40] sm:$0xff]  ;;  %v1764_v23 = vpack.c.bf16 %v134_v18, %v133_v17  ;;  %v143_v29 = vld [vmem:[#allocation5 + $0x50] sm:$0xff]  ;;  %v150_v32 = vpack.c.bf16 %v136_v28, %v135_v27  ;;  %v1420_v36 = vld [vmem:[#allocation8 + $0x68] ss:$16 sps:$4 sm:$0xff]   ;;  %s1182_s5 = sshll.u32 %s1687_s0, 4  ;;  %s1183_s5 = int_to_ptr.vmem [resolvable:$true] %s1182_s5 }
  0x4e   :  { %376 = vmatpush1.bf16.msra.mxu0 %v1395_v6  ;;  %1370 = vmatpush1.bf16.msra.mxu1 %v1395_v6  ;;  %v1766_v24 = vpack.c.bf16 %v142_v20, %v141_v19  ;;  %v154_v33 = vpack.c.bf16 %v144_v30, %v143_v29  ;;  %v137_v37 = vld [vmem:[#allocation5 + $0x20] sm:$0xff]  ;;  %v138_v38 = vld [vmem:[#allocation5 + $0x28] sm:$0xff]  ;;  %v139_v47 = vld [vmem:[#allocation5 + $0x30] sm:$0xff]  ;;  %s1649_s29 = scalar_lea.vmem %s1183_s5, 2048  ;;  %p1654_p6 = scmp.lt.s32.totalorder %s1183_s5, %s1183_s5 }
  0x4f   :  { %377 = vmatprep.subr.bf16.mxu0 %v1396_v7  ;;  %1363 = vmatprep.subr.bf16.mxu1 %v1396_v7  ;;  %v145_v39 = vld [vmem:[#allocation5 + $0x60] sm:$0xff]  ;;  %v146_v40 = vld [vmem:[#allocation5 + $0x68] sm:$0xff]  ;;  %v151_v42 = vpack.c.bf16 %v138_v38, %v137_v37  ;;  %v140_v48 = vld [vmem:[#allocation5 + $0x38] sm:$0xff]  ;;  %p1650_p5 = scmp.ne.s32.totalorder %s1183_s5, %s1649_s29  ;;  %p1655_p7 = scmp.lt.s32.totalorder %s1649_s29, %s1649_s29 }
  0x50   :  { %v1425_v41 = vld [vmem:[#allocation8 + $0x8c] ss:$16 sps:$4 sm:$0xff]   ;;  %v155_v43 = vpack.c.bf16 %v146_v40, %v145_v39  ;;  %v1423_v44 = vld [vmem:[#allocation8 + $0x88] ss:$16 sps:$4 sm:$0xff]   ;;  %v147_v49 = vld [vmem:[#allocation5 + $0x70] sm:$0xff]  ;;  %v152_v52 = vpack.c.bf16 %v140_v48, %v139_v47 }
  0x51   :  { %v1428_v45 = vld [vmem:[#allocation8 + $0xac] ss:$16 sps:$4 sm:$0xff]   ;;  %v1426_v46 = vld [vmem:[#allocation8 + $0xa8] ss:$16 sps:$4 sm:$0xff]   ;;  %v1435_v57 = vld [vmem:[#allocation10 + $0x40] sm:$0xff]   ;;  %p1656_p8 = por %p1655_p7, %p1654_p6 }
  0x52   :  { %378 = vmatpush1.bf16.msra.mxu0 %v1398_v8  ;;  %1371 = vmatpush1.bf16.msra.mxu1 %v1398_v8  ;;  %v148_v50 = vld [vmem:[#allocation5 + $0x78] sm:$0xff]  ;;  %v1436_v58 = vld [vmem:[#allocation10] sm:$0xff]   ;;  %v1437_v59 = vld [vmem:[#allocation10 + $0x48] sm:$0xff]  }
  0x53   :  { %379 = vmatprep.subr.bf16.mxu0 %v1399_v9  ;;  %1364 = vmatprep.subr.bf16.mxu1 %v1399_v9  ;;  %v1431_v51 = vld [vmem:[#allocation8 + $0xcc] ss:$16 sps:$4 sm:$0xff]   ;;  %v156_v53 = vpack.c.bf16 %v148_v50, %v147_v49  ;;  %v1429_v54 = vld [vmem:[#allocation8 + $0xc8] ss:$16 sps:$4 sm:$0xff]   ;;  %v1439_v61 = vld [vmem:[#allocation10 + $0x50] sm:$0xff]   ;;  %v191_v9 = vlaneseq  ;;  %p1657_p9 = pnand %p1656_p8, %p1650_p5 }
  0x54   :  { %v1434_v55 = vld [vmem:[#allocation8 + $0xec] ss:$16 sps:$4 sm:$0xff]   ;;  %v1432_v56 = vld [vmem:[#allocation8 + $0xe8] ss:$16 sps:$4 sm:$0xff]   ;;  %v1440_v62 = vld [vmem:[#allocation10 + $0x10] sm:$0xff]  }
  0x55   :  { %v1438_v60 = vld [vmem:[#allocation10 + $0x8] sm:$0xff]   ;;  %v1441_v63 = vld [vmem:[#allocation10 + $0x58] sm:$0xff]   ;;  %v1443_v2 = vld [vmem:[#allocation10 + $0x60] sm:$0xff]  }
  0x56   :  { %380 = vmatpush1.bf16.msra.mxu0 %v1401_v10  ;;  %1372 = vmatpush1.bf16.msra.mxu1 %v1401_v10  ;;  %v1442_v1 = vld [vmem:[#allocation10 + $0x18] sm:$0xff]   ;;  %v1444_v3 = vld [vmem:[#allocation10 + $0x20] sm:$0xff]   ;;  %v1446_v4 = vld [vmem:[#allocation10 + $0x28] sm:$0xff]   ;;  %v1795_v10 = vshrl.u32 %v191_v9, 7 }
  0x57   :  { %381 = vmatprep.subr.bf16.mxu0 %v1402_v11  ;;  %1365 = vmatprep.subr.bf16.mxu1 %v1402_v11  ;;  %v1447_v5 = vld [vmem:[#allocation10 + $0x70] sm:$0xff]   ;;  %v1449_v7 = vld [vmem:[#allocation10 + $0x78] sm:$0xff]  }
  0x58   :  { %v1448_v6 = vld [vmem:[#allocation10 + $0x30] sm:$0xff]   ;;  %v1450_v8 = vld [vmem:[#allocation10 + $0x38] sm:$0xff]   ;;  %v193_v11 = vsub.s32 0, %v1795_v10 }
  0x5a   :  { %382 = vmatpush1.bf16.msra.mxu0 %v1404_v12  ;;  %1373 = vmatpush1.bf16.msra.mxu1 %v1404_v12  ;;  %v1801_v12 = vld [vmem:[%s98_s26] sm:$0xf] }
  0x5b   :  { %383 = vmatprep.subr.bf16.mxu0 %v1405_v13  ;;  %1366 = vmatprep.subr.bf16.mxu1 %v1405_v13  ;;  %v197_v13 = vsub.s32 1, %v1795_v10 }
  0x5e   :  { %384 = vmatpush1.bf16.msra.mxu0 %v1407_v14  ;;  %1374 = vmatpush1.bf16.msra.mxu1 %v1407_v14  ;;  %v1805_v14 = vrot.slane %v1801_v12, %v193_v11 }
  0x5f   :  { %385 = vmatprep.subr.bf16.mxu0 %v1408_v15  ;;  %1367 = vmatprep.subr.bf16.mxu1 %v1408_v15  ;;  %v1808_v15 = vrot.slane %v1801_v12, %v197_v13 }
  0x62   :  { %386 = vmatpush1.bf16.msra.mxu0 %v1410_v16  ;;  %1375 = vmatpush1.bf16.msra.mxu1 %v1410_v16 }
  0x63   :  { %484 = vmatprep.subr.bf16.mxu1 %v1413_v21  ;;  %1296 = vmatprep.subr.bf16.mxu0 %v1435_v57 }
  0x65   :  { %404 = vmatmul.mubr.bf16.vlgmr.msra.gmra.mrb[0].mxu0 %v1764_v23  ;;  %444 = vmatmul.mubr.bf16.vlgmr.msra.gmra.mrb[0].mxu1 %v1766_v24 }
  0x66   :  { %485 = vmatpush1.bf16.msra.mxu1 %v1411_v22  ;;  %413 = vmatprep.mubr.bf16.mxu0 %v1686_v0 }
  0x67   :  { %486 = vmatprep.subr.bf16.mxu1 %v1416_v25  ;;  %453 = vmatprep.mubr.bf16.mxu1 %v1686_v0 }
  0x68   :  { %1297 = vmatpush3.bf16.msra.mxu0 %v1436_v58 }
  0x69   :  { %1298 = vmatprep.subr.bf16.mxu0 %v1437_v59 }
  0x6a   :  { %487 = vmatpush1.bf16.msra.mxu1 %v1414_v26 }
  0x6b   :  { %488 = vmatprep.subr.bf16.mxu1 %v1419_v31 }
  0x6c   :  { %1299 = vmatpush3.bf16.msra.mxu0 %v1438_v60 }
  0x6d   :  { %414 = vmatmul.mubr.bf16.gmra.mrb[4].mxu0 %v150_v32  ;;  %454 = vmatmul.mubr.bf16.gmra.mrb[4].mxu1 %v154_v33 }
  0x6e   :  { %489 = vmatpush1.bf16.msra.mxu1 %v1417_v34  ;;  %423 = vmatprep.mubr.bf16.mxu0 %v1686_v0 }
  0x6f   :  { %490 = vmatprep.subr.bf16.mxu1 %v1422_v35  ;;  %463 = vmatprep.mubr.bf16.mxu1 %v1686_v0 }
  0x70   :  { %1300 = vmatprep.subr.bf16.mxu0 %v1439_v61 }
  0x71   :  { %1301 = vmatpush3.bf16.msra.mxu0 %v1440_v62 }
  0x72   :  { %491 = vmatpush1.bf16.msra.mxu1 %v1420_v36  ;;  %1302 = vmatprep.subr.bf16.mxu0 %v1441_v63 }
  0x73   :  { %492 = vmatprep.subr.bf16.mxu1 %v1425_v41 }
  0x75   :  { %424 = vmatmul.mubr.bf16.gmra.mrb[8].mxu0 %v151_v42  ;;  %464 = vmatmul.mubr.bf16.gmra.mrb[8].mxu1 %v155_v43 }
  0x76   :  { %493 = vmatpush1.bf16.msra.mxu1 %v1423_v44  ;;  %433 = vmatprep.mubr.bf16.mxu0 %v1686_v0 }
  0x77   :  { %494 = vmatprep.subr.bf16.mxu1 %v1428_v45  ;;  %473 = vmatprep.mubr.bf16.mxu1 %v1686_v0 }
  0x78   :  { %1303 = vmatpush3.bf16.msra.mxu0 %v1442_v1 }
  0x79   :  { %1304 = vmatprep.subr.bf16.mxu0 %v1443_v2 }
  0x7a   :  { %495 = vmatpush1.bf16.msra.mxu1 %v1426_v46 }
  0x7b   :  { %496 = vmatprep.subr.bf16.mxu1 %v1431_v51 }
  0x7c   :  { %1305 = vmatpush3.bf16.msra.mxu0 %v1444_v3 }
  0x7d   :  { %434 = vmatmul.mubr.bf16.gmra.mrb[12].mxu0 %v152_v52  ;;  %474 = vmatmul.mubr.bf16.gmra.mrb[12].mxu1 %v156_v53 }
  0x7e   :  { %497 = vmatpush1.bf16.msra.mxu1 %v1429_v54  ;;  %516 = vmatprep.mubr.bf16.mxu1 %v1686_v0 }
  0x7f   :  { %498 = vmatprep.subr.bf16.mxu1 %v1434_v55 }
  0x82   :  { %499 = vmatpush1.bf16.msra.mxu1 %v1432_v56 }
  0x85   :  { %517 = vmatmul.mubr.bf16.vlgmr.msra.gmra.mrb[16].mxu1 %v1764_v23 }
  0x86   :  { %526 = vmatprep.mubr.bf16.mxu1 %v1686_v0 }
  0x8d   :  { %527 = vmatmul.mubr.bf16.gmra.mrb[20].mxu1 %v150_v32 }
  0x8e   :  { %536 = vmatprep.mubr.bf16.mxu1 %v1686_v0 }
  0x95   :  { %537 = vmatmul.mubr.bf16.gmra.mrb[24].mxu1 %v151_v42 }
  0x96   :  { %546 = vmatprep.mubr.bf16.mxu1 %v1686_v0 }
  0x9d   :  { %547 = vmatmul.mubr.bf16.gmra.mrb[28].mxu1 %v152_v52 }
  0x9e   :  { %556 = vmatprep.mubr.bf16.mxu1 %v1686_v0 }
  0xa5   :  { %557 = vmatmul.mubr.bf16.gmra.mrb[32].mxu1 %v1766_v24 }
  0xa6   :  { %566 = vmatprep.mubr.bf16.mxu1 %v1686_v0 }
  0xad   :  { %567 = vmatmul.mubr.bf16.gmra.mrb[36].mxu1 %v154_v33 }
  0xae   :  { %576 = vmatprep.mubr.bf16.mxu1 %v1686_v0 }
  0xb5   :  { %577 = vmatmul.mubr.bf16.gmra.mrb[40].mxu1 %v155_v43 }
  0xb6   :  { %586 = vmatprep.mubr.bf16.mxu1 %v1686_v0  ;;  %v1445_v0 = vld [vmem:[#allocation10 + $0x68] sm:$0xff]  }
  0xb7   :  { %1306 = vmatprep.subr.bf16.mxu0 %v1445_v0 }
  0xb8   :  { %1307 = vmatpush3.bf16.msra.mxu0 %v1446_v4 }
  0xb9   :  { %1308 = vmatprep.subr.bf16.mxu0 %v1447_v5 }
  0xbc   :  { %1309 = vmatpush3.bf16.msra.mxu0 %v1448_v6 }
  0xbd   :  { %587 = vmatmul.mubr.bf16.gmra.mrb[44].mxu1 %v156_v53  ;;  %1310 = vmatprep.subr.bf16.mxu0 %v1449_v7 }
  0xc0   :  { %1311 = vmatpush3.bf16.msra.mxu0 %v1450_v8 }
 0x138   :  { %v405_v16 = vpop.f32.mrb[0].mxu0  ;;  %v445_v17 = vpop.f32.mrb[0].mxu1 }
 0x139   :  { %v1811_v18 = vadd.f32 %v405_v16, %v1805_v14  ;;  %v1814_v19 = vadd.f32 %v445_v17, %v1805_v14  ;;  %v407_v20 = vpop.f32.mrb[1].mxu0  ;;  %v447_v21 = vpop.f32.mrb[1].mxu1 }
 0x13a   :  { %v1817_v22 = vadd.f32 %v407_v20, %v1808_v15  ;;  %v1820_v23 = vadd.f32 %v447_v21, %v1808_v15  ;;  %v409_v24 = vpop.f32.mrb[2].mxu0  ;;  %v449_v25 = vpop.f32.mrb[2].mxu1 }
 0x13b   :  { %v1246_v26 = vmul.f32 -1.442695, %v1811_v18  ;;  %v1824_v27 = vadd.f32 %v409_v24, %v1805_v14  ;;  %v411_v28 = vpop.f32.mrb[3].mxu0  ;;  %v451_v29 = vpop.f32.mrb[3].mxu1  ;;  %v1262_v30 = vmul.f32 -1.442695, %v1814_v19  ;;  %v1834_v35 = vadd.f32 %v449_v25, %v1805_v14 }
 0x13c   :  { %v1247_v31 = vmul.f32 -1.442695, %v1817_v22  ;;  %v1829_v32 = vadd.f32 %v411_v28, %v1808_v15  ;;  %v1263_v34 = vmul.f32 -1.442695, %v1820_v23  ;;  %v1845_v44 = vadd.f32 %v451_v29, %v1808_v15 }
 0x13d   :  { %1451 = vpow2.f32 %v1246_v26  ;;  %v1248_v33 = vmul.f32 -1.442695, %v1824_v27  ;;  %v1264_v43 = vmul.f32 -1.442695, %v1834_v35 }
 0x13e   :  { %1453 = vpow2.f32 %v1247_v31  ;;  %v1249_v36 = vmul.f32 -1.442695, %v1829_v32  ;;  %v1265_v55 = vmul.f32 -1.442695, %v1845_v44 }
 0x13f   :  { %1455 = vpow2.f32 %v1262_v30 }
 0x140   :  { %v415_v37 = vpop.f32.mrb[4].mxu0  ;;  %v455_v38 = vpop.f32.mrb[4].mxu1  ;;  %1457 = vpow2.f32 %v1248_v33 }
 0x141   :  { %v1838_v39 = vadd.f32 %v415_v37, %v1805_v14  ;;  %v1841_v40 = vadd.f32 %v455_v38, %v1805_v14  ;;  %v417_v41 = vpop.f32.mrb[5].mxu0  ;;  %v457_v42 = vpop.f32.mrb[5].mxu1  ;;  %1459 = vpow2.f32 %v1263_v34  ;;  %v201_v38 = vsub.s32 2, %v1795_v10 }
 0x142   :  { %v1848_v45 = vadd.f32 %v417_v41, %v1808_v15  ;;  %v419_v46 = vpop.f32.mrb[6].mxu0  ;;  %v459_v47 = vpop.f32.mrb[6].mxu1  ;;  %1461 = vpow2.f32 %v1249_v36  ;;  %v1864_v58 = vadd.f32 %v457_v42, %v1808_v15  ;;  %v205_v41 = vsub.s32 3, %v1795_v10 }
 0x143   :  { %v1250_v48 = vmul.f32 -1.442695, %v1838_v39  ;;  %v1852_v49 = vadd.f32 %v419_v46, %v1805_v14  ;;  %v421_v50 = vpop.f32.mrb[7].mxu0  ;;  %v1854_v51 = vpop.f32.mrb[7].mxu1  ;;  %v1858_v53 = vadd.f32 %v459_v47, %v1805_v14  ;;  %v1266_v57 = vmul.f32 -1.442695, %v1841_v40 }
 0x144   :  { %v1251_v52 = vmul.f32 -1.442695, %v1848_v45  ;;  %v1267_v8 = vmul.f32 -1.442695, %v1864_v58  ;;  %v1880_v29 = vadd.f32 %v421_v50, %v1808_v15 }
 0x145   :  { %1463 = vpow2.f32 %v1250_v48  ;;  %v1252_v54 = vmul.f32 -1.442695, %v1852_v49 }
 0x146   :  { %1465 = vpow2.f32 %v1264_v43 }
 0x147   :  { %v1452_v56 = vpop.eup %1451  ;;  %1467 = vpow2.f32 %v1251_v52 }
 0x148   :  { %v693_v59 = vadd.f32 1.0, %v1452_v56  ;;  %v425_v60 = vpop.f32.mrb[8].mxu0  ;;  %v465_v61 = vpop.f32.mrb[8].mxu1  ;;  %1469 = vpow2.f32 %v1252_v54  ;;  %v1253_v54 = vmul.f32 -1.442695, %v1880_v29 }
 0x149   :  { %v1454_v62 = vpop.eup %1453  ;;  %v1867_v63 = vadd.f32 %v465_v61, %v1805_v14  ;;  %v427_v1 = vpop.f32.mrb[9].mxu0  ;;  %1471 = vpow2.f32 %v1265_v55  ;;  %v1887_v43 = vadd.f32 %v425_v60, %v1805_v14 }
 0x14a   :  { %v467_v2 = vpop.f32.mrb[9].mxu1  ;;  %v1456_v3 = vpop.eup %1455  ;;  %v694_v0 = vadd.f32 1.0, %v1454_v62  ;;  %1473 = vpow2.f32 %v1266_v57  ;;  %v1901_v60 = vadd.f32 %v427_v1, %v1808_v15  ;;  %v1917_v1 = vrot.slane %v1801_v12, %v205_v41 }
 0x14b   :  { %v1870_v4 = vadd.f32 %v467_v2, %v1808_v15  ;;  %v429_v5 = vpop.f32.mrb[10].mxu0  ;;  %v469_v6 = vpop.f32.mrb[10].mxu1  ;;  %1475 = vrcp.f32 %v693_v59  ;;  %v709_v21 = vadd.f32 1.0, %v1456_v3 }
 0x14c   :  { %v1458_v7 = vpop.eup %1457  ;;  %v431_v9 = vpop.f32.mrb[11].mxu0  ;;  %1477 = vrcp.f32 %v694_v0  ;;  %v1874_v20 = vadd.f32 %v469_v6, %v1805_v14  ;;  %v1904_v61 = vadd.f32 %v429_v5, %v1805_v14  ;;  %v1910_v0 = vrot.slane %v1801_v12, %v201_v38 }
 0x14d   :  { %v1460_v11 = vpop.eup %1459  ;;  %v695_v13 = vadd.f32 1.0, %v1458_v7  ;;  %v471_v16 = vpop.f32.mrb[11].mxu1  ;;  %v1907_v3 = vadd.f32 %v431_v9, %v1808_v15  ;;  %v1254_v7 = vmul.f32 -1.442695, %v1887_v43 }
 0x14e   :  { %v1462_v17 = vpop.eup %1461  ;;  %v1877_v25 = vadd.f32 %v471_v16, %v1808_v15  ;;  %v710_v28 = vadd.f32 1.0, %v1460_v11 }
 0x14f   :  { %1479 = vrcp.f32 %v695_v13  ;;  %v696_v24 = vadd.f32 1.0, %v1462_v17  ;;  %v1464_v26 = vpop.eup %1463  ;;  %v1268_v13 = vmul.f32 -1.442695, %v1858_v53  ;;  %v1925_v17 = vadd.f32 %v1854_v51, %v1808_v15 }
 0x150   :  { %1481 = vpow2.f32 %v1267_v8  ;;  %v1466_v30 = vpop.eup %1465  ;;  %v697_v31 = vadd.f32 1.0, %v1464_v26  ;;  %v435_v33 = vpop.f32.mrb[12].mxu0 }
 0x151   :  { %1483 = vrcp.f32 %v696_v24  ;;  %v1468_v34 = vpop.eup %1467  ;;  %v475_v36 = vpop.f32.mrb[12].mxu1  ;;  %v711_v52 = vadd.f32 1.0, %v1466_v30  ;;  %v1256_v24 = vmul.f32 -1.442695, %v1904_v61  ;;  %v1934_v51 = vadd.f32 %v435_v33, %v1805_v14 }
 0x152   :  { %v1882_v37 = vpop.f32.mrb[13].mxu0  ;;  %1485 = vrcp.f32 %v709_v21  ;;  %v698_v42 = vadd.f32 1.0, %v1468_v34  ;;  %v1890_v46 = vadd.f32 %v475_v36, %v1805_v14  ;;  %v477_v47 = vpop.f32.mrb[13].mxu1  ;;  %v1255_v21 = vmul.f32 -1.442695, %v1901_v60 }
 0x153   :  { %v1892_v48 = vpop.f32.mrb[14].mxu0  ;;  %v1470_v50 = vpop.eup %1469  ;;  %1487 = vrcp.f32 %v710_v28  ;;  %v1896_v55 = vadd.f32 %v477_v47, %v1808_v15 }
 0x154   :  { %v479_v10 = vpop.f32.mrb[14].mxu1  ;;  %v1898_v56 = vpop.f32.mrb[15].mxu0  ;;  %1489 = vrcp.f32 %v697_v31  ;;  %v699_v59 = vadd.f32 1.0, %v1470_v50  ;;  %v1257_v31 = vmul.f32 -1.442695, %v1907_v3 }
 0x155   :  { %v1472_v57 = vpop.eup %1471  ;;  %v481_v62 = vpop.f32.mrb[15].mxu1  ;;  %1491 = vrcp.f32 %v698_v42  ;;  %v1914_v8 = vadd.f32 %v479_v10, %v1805_v14 }
 0x156   :  { %v1474_v2 = vpop.eup %1473  ;;  %1493 = vrcp.f32 %v699_v59  ;;  %v712_v11 = vadd.f32 1.0, %v1472_v57  ;;  %v1921_v9 = vadd.f32 %v481_v62, %v1808_v15 }
 0x157   :  { %v1476_v6 = vpop.eup %1475  ;;  %1495 = vrcp.f32 %v711_v52  ;;  %v713_v30 = vadd.f32 1.0, %v1474_v2 }
 0x158   :  { %v1478_v5 = vpop.eup %1477  ;;  %1497 = vpow2.f32 %v1253_v54  ;;  %v518_v12 = vpop.f32.mrb[16].mxu1  ;;  %v789_v28 = vmul.f32 %v1476_v6, %v1811_v18 }
 0x159   :  { %v1480_v16 = vpop.eup %1479  ;;  %v519_v34 = vadd.f32 %v518_v12, %v1910_v0  ;;  %v520_v36 = vpop.f32.mrb[17].mxu1  ;;  %v790_v41 = vmul.f32 %v1478_v5, %v1817_v22  ;;  %1499 = vpow2.f32 %v1254_v7 }
 0x15a   :  { %v1482_v26 = vpop.eup %1481  ;;  %v521_v42 = vadd.f32 %v520_v36, %v1917_v1  ;;  %v522_v47 = vpop.f32.mrb[18].mxu1  ;;  %v791_v50 = vmul.f32 %v1480_v16, %v1824_v27  ;;  %1501 = vrcp.f32 %v712_v11  ;;  %v1258_v27 = vmul.f32 -1.442695, %v1934_v51 }
 0x15b   :  { %v1484_v38 = vpop.eup %1483  ;;  %v821_v18 = vmul.f32 %v789_v28, %v519_v34  ;;  %v523_v52 = vadd.f32 %v522_v47, %v1910_v0  ;;  %v524_v54 = vpop.f32.mrb[19].mxu1  ;;  %1503 = vpow2.f32 %v1255_v21  ;;  %v714_v62 = vadd.f32 1.0, %v1482_v26 }
 0x15c   :  { %v1939_v10 = vpop.eup %1485  ;;  %v792_v57 = vmul.f32 %v1484_v38, %v1829_v32  ;;  %v822_v22 = vmul.f32 %v790_v41, %v521_v42  ;;  %v525_v59 = vadd.f32 %v524_v54, %v1917_v1  ;;  %1505 = vrcp.f32 %v713_v30 }
 0x15d   :  { %v1943_v33 = vpop.eup %1487  ;;  %v823_v2 = vmul.f32 %v791_v50, %v523_v52  ;;  %1507 = vpow2.f32 %v1256_v24  ;;  %v1269_v32 = vmul.f32 -1.442695, %v1925_v17 }
 0x15e   :  { %v1490_v6 = vpop.eup %1489  ;;  %v824_v7 = vmul.f32 %v792_v57, %v525_v59  ;;  %1509 = vpow2.f32 %v1268_v13  ;;  %v1270_v13 = vmul.f32 -1.442695, %v1867_v63  ;;  %v1272_v59 = vmul.f32 -1.442695, %v1874_v20 }
 0x15f   :  { %v1492_v5 = vpop.eup %1491  ;;  %v869_v11 = vpack.c.bf16 %v823_v2, %v821_v18  ;;  %1511 = vpow2.f32 %v1257_v31  ;;  %v793_v30 = vmul.f32 %v1490_v6, %v1838_v39 }
 0x160   :  { %v1494_v16 = vpop.eup %1493  ;;  %v528_v21 = vpop.f32.mrb[20].mxu1  ;;  %v870_v12 = vpack.c.bf16 %v824_v7, %v822_v22  ;;  %1513 = vrcp.f32 %v714_v62  ;;  %v794_v36 = vmul.f32 %v1492_v5, %v1848_v45  ;;  %v1271_v45 = vmul.f32 -1.442695, %v1870_v4 }
 0x161   :  { %v1947_v28 = vpop.eup %1495  ;;  %v529_v26 = vadd.f32 %v528_v21, %v1910_v0  ;;  %v530_v24 = vpop.f32.mrb[21].mxu1  ;;  %1515 = vpow2.f32 %v1258_v27  ;;  %v795_v31 = vmul.f32 %v1494_v16, %v1852_v49  ;;  %v1273_v7 = vmul.f32 -1.442695, %v1877_v25 }
 0x162   :  { %v1498_v34 = vpop.eup %1497  ;;  %v531_v38 = vadd.f32 %v530_v24, %v1917_v1  ;;  %v532_v41 = vpop.f32.mrb[22].mxu1  ;;  %1045 = vmatprep.mubr.bf16.mxu0 %v870_v12  ;;  %1517 = vpow2.f32 %v1269_v32  ;;  %v1973_v32 = vadd.f32 %v1882_v37, %v1808_v15 }
 0x163   :  { %v700_v42 = vadd.f32 1.0, %v1498_v34  ;;  %v1955_v47 = vmul.f32 %v793_v30, %v529_v26  ;;  %v533_v39 = vadd.f32 %v532_v41, %v1910_v0  ;;  %v534_v50 = vpop.f32.mrb[23].mxu1  ;;  %1046 = vmatmul.mubr.bf16.vlgmr.msra.gmra.mrb[16].mxu0 %v869_v11  ;;  %v1500_v18 = vpop.eup %1499  ;;  %v1274_v30 = vmul.f32 -1.442695, %v1890_v46 }
 0x164   :  { %v1959_v52 = vmul.f32 %v794_v36, %v531_v38  ;;  %v1961_v54 = vpop.eup %1501  ;;  %v701_v57 = vadd.f32 1.0, %v1500_v18  ;;  %v1980_v36 = vadd.f32 %v1892_v48, %v1805_v14  ;;  %v1275_v18 = vmul.f32 -1.442695, %v1896_v55 }
 0x165   :  { %1519 = vrcp.f32 %v700_v42  ;;  %v1963_v22 = vmul.f32 %v795_v31, %v533_v39  ;;  %v1504_v49 = vpop.eup %1503  ;;  %v1259_v31 = vmul.f32 -1.442695, %v1973_v32  ;;  %v1985_v42 = vadd.f32 %v1898_v56, %v1808_v15 }
 0x166   :  { %1521 = vpow2.f32 %v1270_v13  ;;  %v1966_v62 = vpop.eup %1505  ;;  %v702_v2 = vadd.f32 1.0, %v1504_v49  ;;  %v1260_v48 = vmul.f32 -1.442695, %v1980_v36 }
 0x167   :  { %1523 = vrcp.f32 %v701_v57  ;;  %v871_v6 = vpack.c.bf16 %v1963_v22, %v1955_v47  ;;  %v1508_v27 = vpop.eup %1507 }
 0x168   :  { %1525 = vpow2.f32 %v1271_v45  ;;  %v538_v5 = vpop.f32.mrb[24].mxu1  ;;  %v1510_v11 = vpop.eup %1509  ;;  %v703_v16 = vadd.f32 1.0, %v1508_v27  ;;  %v535_v45 = vadd.f32 %v534_v50, %v1917_v1  ;;  %v1261_v27 = vmul.f32 -1.442695, %v1985_v42 }
 0x169   :  { %1527 = vrcp.f32 %v702_v2  ;;  %v540_v21 = vpop.f32.mrb[25].mxu1  ;;  %v1512_v12 = vpop.eup %1511  ;;  %v715_v41 = vadd.f32 1.0, %v1510_v11  ;;  %v539_v2 = vadd.f32 %v538_v5, %v1910_v0 }
 0x16a   :  { %1529 = vpow2.f32 %v1272_v59  ;;  %v542_v26 = vpop.f32.mrb[26].mxu1  ;;  %v1976_v24 = vpop.eup %1513  ;;  %v704_v34 = vadd.f32 1.0, %v1512_v12  ;;  %v1276_v59 = vmul.f32 -1.442695, %v1914_v8 }
 0x16b   :  { %1531 = vrcp.f32 %v703_v16  ;;  %v544_v13 = vpop.f32.mrb[27].mxu1  ;;  %v1516_v38 = vpop.eup %1515 }
 0x16c   :  { %1533 = vpow2.f32 %v1273_v7  ;;  %v705_v37 = vadd.f32 1.0, %v1516_v38  ;;  %v1518_v39 = vpop.eup %1517  ;;  %v1277_v7 = vmul.f32 -1.442695, %v1921_v9  ;;  %v543_v38 = vadd.f32 %v542_v26, %v1910_v0 }
 0x16d   :  { %1535 = vrcp.f32 %v704_v34  ;;  %v716_v5 = vadd.f32 1.0, %v1518_v39  ;;  %v545_v26 = vadd.f32 %v544_v13, %v1917_v1 }
 0x16e   :  { %1537 = vpow2.f32 %v1274_v30 }
 0x16f   :  { %v1520_v14 = vpop.eup %1519  ;;  %1539 = vrcp.f32 %v705_v37 }
 0x170   :  { %v1522_v57 = vpop.eup %1521  ;;  %1541 = vrcp.f32 %v715_v41  ;;  %v796_v49 = vmul.f32 %v1520_v14, %v1880_v29  ;;  %v548_v15 = vpop.f32.mrb[28].mxu1  ;;  %v541_v29 = vadd.f32 %v540_v21, %v1917_v1 }
 0x171   :  { %v1524_v56 = vpop.eup %1523  ;;  %1543 = vpow2.f32 %v1259_v31  ;;  %v1995_v50 = vpop.f32.mrb[29].mxu1 }
 0x172   :  { %v1526_v11 = vpop.eup %1525  ;;  %v797_v16 = vmul.f32 %v1524_v56, %v1887_v43  ;;  %1545 = vpow2.f32 %v1275_v18  ;;  %v828_v12 = vmul.f32 %v796_v49, %v535_v45  ;;  %v1999_v30 = vpop.f32.mrb[30].mxu1  ;;  %v717_v45 = vadd.f32 1.0, %v1522_v57 }
 0x173   :  { %v1528_v34 = vpop.eup %1527  ;;  %1547 = vpow2.f32 %v1260_v48  ;;  %v2002_v41 = vpop.f32.mrb[31].mxu1  ;;  %v805_v56 = vmul.f32 %v1939_v10, %v1814_v19  ;;  %v806_v57 = vmul.f32 %v1943_v33, %v1820_v23  ;;  %v807_v19 = vmul.f32 %v1947_v28, %v1834_v35 }
 0x174   :  { %v1530_v37 = vpop.eup %1529  ;;  %v798_v31 = vmul.f32 %v1528_v34, %v1901_v60  ;;  %1549 = vpow2.f32 %v1276_v59  ;;  %v829_v14 = vmul.f32 %v797_v16, %v539_v2  ;;  %v872_v43 = vpack.c.bf16 %v828_v12, %v1959_v52 }
 0x175   :  { %v1532_v18 = vpop.eup %1531  ;;  %1551 = vpow2.f32 %v1261_v27  ;;  %v718_v60 = vadd.f32 1.0, %v1526_v11  ;;  %v549_v2 = vadd.f32 %v548_v15, %v1910_v0  ;;  %v719_v10 = vadd.f32 1.0, %v1530_v37 }
 0x176   :  { %v1534_v21 = vpop.eup %1533  ;;  %v799_v49 = vmul.f32 %v1532_v18, %v1904_v61  ;;  %1553 = vpow2.f32 %v1277_v7  ;;  %v830_v39 = vmul.f32 %v798_v31, %v541_v29  ;;  %1053 = vmatprep.mubr.bf16.mxu0 %v872_v43  ;;  %v808_v31 = vmul.f32 %v1961_v54, %v1845_v44 }
 0x177   :  { %v1536_v48 = vpop.eup %1535  ;;  %1555 = vrcp.f32 %v716_v5  ;;  %1054 = vmatmul.mubr.bf16.gmra.mrb[20].mxu0 %v871_v6  ;;  %v720_v15 = vadd.f32 1.0, %v1534_v21 }
 0x178   :  { %v1538_v52 = vpop.eup %1537  ;;  %v800_v61 = vmul.f32 %v1536_v48, %v1907_v3  ;;  %v831_v59 = vmul.f32 %v799_v49, %v543_v38  ;;  %v558_v13 = vpop.f32.mrb[32].mxu1  ;;  %1557 = vrcp.f32 %v717_v45 }
 0x179   :  { %v1540_v27 = vpop.eup %1539  ;;  %v559_v7 = vadd.f32 %v558_v13, %v1910_v0  ;;  %v560_v47 = vpop.f32.mrb[33].mxu1  ;;  %1559 = vrcp.f32 %v718_v60  ;;  %v721_v48 = vadd.f32 1.0, %v1538_v52  ;;  %v809_v60 = vmul.f32 %v1966_v62, %v1841_v40 }
 0x17a   :  { %v1542_v22 = vpop.eup %1541  ;;  %v801_v6 = vmul.f32 %v1540_v27, %v1934_v51  ;;  %v832_v11 = vmul.f32 %v800_v61, %v545_v26  ;;  %v873_v23 = vpack.c.bf16 %v831_v59, %v829_v14  ;;  %v561_v3 = vadd.f32 %v560_v47, %v1917_v1  ;;  %v562_v33 = vpop.f32.mrb[34].mxu1 }
 0x17b   :  { %v1544_v16 = vpop.eup %1543  ;;  %v2022_v12 = vmul.f32 %v805_v56, %v559_v7  ;;  %v563_v35 = vadd.f32 %v562_v33, %v1910_v0  ;;  %v564_v28 = vpop.f32.mrb[35].mxu1  ;;  %1561 = vrcp.f32 %v719_v10  ;;  %v810_v13 = vmul.f32 %v1976_v24, %v1864_v58 }
 0x17c   :  { %v1546_v29 = vpop.eup %1545  ;;  %v706_v34 = vadd.f32 1.0, %v1544_v16  ;;  %v2025_v5 = vmul.f32 %v801_v6, %v549_v2  ;;  %v874_v38 = vpack.c.bf16 %v832_v11, %v830_v39  ;;  %v2027_v37 = vmul.f32 %v806_v57, %v561_v3 }
 0x17d   :  { %v1548_v51 = vpop.eup %1547  ;;  %v2031_v14 = vmul.f32 %v807_v19, %v563_v35  ;;  %v565_v43 = vadd.f32 %v564_v28, %v1917_v1  ;;  %v722_v57 = vadd.f32 1.0, %v1546_v29  ;;  %v811_v7 = vmul.f32 %v1542_v22, %v1858_v53 }
 0x17e   :  { %v1550_v18 = vpop.eup %1549  ;;  %1563 = vrcp.f32 %v706_v34  ;;  %v707_v45 = vadd.f32 1.0, %v1548_v51  ;;  %1061 = vmatprep.mubr.bf16.mxu0 %v874_v38  ;;  %v551_v22 = vadd.f32 %v1995_v50, %v1917_v1  ;;  %v553_v38 = vadd.f32 %v1999_v30, %v1910_v0 }
 0x17f   :  { %v1552_v21 = vpop.eup %1551  ;;  %1565 = vrcp.f32 %v720_v15  ;;  %1062 = vmatmul.mubr.bf16.gmra.mrb[24].mxu0 %v873_v23  ;;  %v2034_v49 = vmul.f32 %v808_v31, %v565_v43  ;;  %v877_v39 = vpack.c.bf16 %v2031_v14, %v2022_v12  ;;  %v723_v27 = vadd.f32 1.0, %v1550_v18 }
 0x180   :  { %v1554_v26 = vpop.eup %1553  ;;  %1567 = vrcp.f32 %v707_v45  ;;  %v708_v44 = vadd.f32 1.0, %v1552_v21  ;;  %v568_v54 = vpop.f32.mrb[36].mxu1  ;;  %v555_v45 = vadd.f32 %v2002_v41, %v1917_v1 }
 0x181   :  { %v1556_v56 = vpop.eup %1555  ;;  %v569_v61 = vadd.f32 %v568_v54, %v1910_v0  ;;  %v570_v59 = vpop.f32.mrb[37].mxu1  ;;  %v878_v2 = vpack.c.bf16 %v2034_v49, %v2027_v37  ;;  %v724_v47 = vadd.f32 1.0, %v1554_v26 }
 0x182   :  { %1569 = vrcp.f32 %v708_v44  ;;  %v571_v52 = vadd.f32 %v570_v59, %v1917_v1  ;;  %v572_v19 = vpop.f32.mrb[38].mxu1  ;;  %v1558_v10 = vpop.eup %1557  ;;  %v812_v11 = vmul.f32 %v1556_v56, %v1925_v17 }
 0x183   :  { %v2047_v40 = vmul.f32 %v809_v60, %v569_v61  ;;  %v573_v62 = vadd.f32 %v572_v19, %v1910_v0  ;;  %v574_v6 = vpop.f32.mrb[39].mxu1  ;;  %1571 = vrcp.f32 %v721_v48  ;;  %v1560_v24 = vpop.eup %1559  ;;  %v813_v29 = vmul.f32 %v1558_v10, %v1867_v63 }
 0x184   :  { %v2051_v23 = vmul.f32 %v810_v13, %v571_v52  ;;  %v575_v58 = vadd.f32 %v574_v6, %v1917_v1  ;;  %1573 = vrcp.f32 %v722_v57  ;;  %v814_v43 = vmul.f32 %v1560_v24, %v1870_v4 }
 0x185   :  { %v2054_v3 = vmul.f32 %v811_v7, %v573_v62  ;;  %1575 = vrcp.f32 %v723_v27  ;;  %v1562_v53 = vpop.eup %1561 }
 0x186   :  { %v2056_v33 = vmul.f32 %v812_v11, %v575_v58  ;;  %1577 = vrcp.f32 %v724_v47  ;;  %v815_v18 = vmul.f32 %v1562_v53, %v1874_v20 }
 0x187   :  { %v879_v17 = vpack.c.bf16 %v2054_v3, %v2047_v40 }
 0x188   :  { %v1564_v16 = vpop.eup %1563  ;;  %v578_v15 = vpop.f32.mrb[40].mxu1  ;;  %v880_v35 = vpack.c.bf16 %v2056_v33, %v2051_v23 }
 0x189   :  { %v1566_v28 = vpop.eup %1565  ;;  %v802_v34 = vmul.f32 %v1564_v16, %v1973_v32  ;;  %v579_v51 = vadd.f32 %v578_v15, %v1910_v0  ;;  %v580_v31 = vpop.f32.mrb[41].mxu1 }
 0x18a   :  { %v1568_v50 = vpop.eup %1567  ;;  %v581_v21 = vadd.f32 %v580_v31, %v1917_v1  ;;  %v582_v26 = vpop.f32.mrb[42].mxu1  ;;  %v816_v56 = vmul.f32 %v1566_v28, %v1877_v25 }
 0x18b   :  { %v803_v63 = vmul.f32 %v1568_v50, %v1980_v36  ;;  %v834_v32 = vmul.f32 %v802_v34, %v551_v22  ;;  %v845_v48 = vmul.f32 %v813_v29, %v579_v51  ;;  %v583_v30 = vadd.f32 %v582_v26, %v1910_v0  ;;  %v584_v44 = vpop.f32.mrb[43].mxu1 }
 0x18c   :  { %v1570_v54 = vpop.eup %1569  ;;  %v846_v60 = vmul.f32 %v814_v43, %v581_v21  ;;  %v585_v4 = vadd.f32 %v584_v44, %v1917_v1 }
 0x18d   :  { %v804_v20 = vmul.f32 %v1570_v54, %v1985_v42  ;;  %v835_v57 = vmul.f32 %v803_v63, %v553_v38  ;;  %v847_v41 = vmul.f32 %v815_v18, %v583_v30  ;;  %v1572_v61 = vpop.eup %1571 }
 0x18e   :  { %v848_v59 = vmul.f32 %v816_v56, %v585_v4  ;;  %v1574_v13 = vpop.eup %1573  ;;  %v817_v25 = vmul.f32 %v1572_v61, %v1890_v46 }
 0x18f   :  { %v836_v27 = vmul.f32 %v804_v20, %v555_v45  ;;  %v875_v36 = vpack.c.bf16 %v835_v57, %v2025_v5  ;;  %v881_v52 = vpack.c.bf16 %v847_v41, %v845_v48  ;;  %v1576_v19 = vpop.eup %1575  ;;  %v818_v42 = vmul.f32 %v1574_v13, %v1896_v55 }
 0x190   :  { %v588_v10 = vpop.f32.mrb[44].mxu1  ;;  %v882_v7 = vpack.c.bf16 %v848_v59, %v846_v60  ;;  %v1578_v47 = vpop.eup %1577  ;;  %v819_v58 = vmul.f32 %v1576_v19, %v1914_v8 }
 0x191   :  { %v876_v40 = vpack.c.bf16 %v836_v27, %v834_v32  ;;  %v589_v62 = vadd.f32 %v588_v10, %v1910_v0  ;;  %v590_v6 = vpop.f32.mrb[45].mxu1  ;;  %v820_v33 = vmul.f32 %v1578_v47, %v1921_v9 }
 0x192   :  { %v591_v11 = vadd.f32 %v590_v6, %v1917_v1  ;;  %v592_v23 = vpop.f32.mrb[46].mxu1 }
 0x193   :  { %1069 = vmatprep.mubr.bf16.mxu0 %v876_v40  ;;  %v849_v5 = vmul.f32 %v817_v25, %v589_v62  ;;  %v593_v24 = vadd.f32 %v592_v23, %v1910_v0  ;;  %v594_v3 = vpop.f32.mrb[47].mxu1 }
 0x194   :  { %1070 = vmatmul.mubr.bf16.gmra.mrb[28].mxu0 %v875_v36  ;;  %v850_v46 = vmul.f32 %v818_v42, %v591_v11  ;;  %v595_v53 = vadd.f32 %v594_v3, %v1917_v1  ;;  %v2098_v1 = vld [vmem:[%s103_s28] ss:$0 sm:$0xff] }
 0x195   :  { %1077 = vmatprep.mubr.bf16.mxu0 %v878_v2  ;;  %v851_v55 = vmul.f32 %v819_v58, %v593_v24 }
 0x196   :  { %v852_v22 = vmul.f32 %v820_v33, %v595_v53 }
 0x197   :  { %v883_v16 = vpack.c.bf16 %v851_v55, %v849_v5 }
 0x198   :  { %v884_v8 = vpack.c.bf16 %v852_v22, %v850_v46 }
 0x19c   :  { %1078 = vmatmul.mubr.bf16.gmra.mrb[32].mxu0 %v877_v39 }
 0x19d   :  { %1085 = vmatprep.mubr.bf16.mxu0 %v880_v35 }
 0x1a4   :  { %1086 = vmatmul.mubr.bf16.gmra.mrb[36].mxu0 %v879_v17 }
 0x1a5   :  { %1093 = vmatprep.mubr.bf16.mxu0 %v882_v7 }
 0x1ac   :  { %1094 = vmatmul.mubr.bf16.gmra.mrb[40].mxu0 %v881_v52 }
 0x1ad   :  { %1101 = vmatprep.mubr.bf16.mxu0 %v884_v8 }
 0x1b4   :  { %1102 = vmatmul.mubr.bf16.gmra.mrb[44].mxu0 %v883_v16 }
 0x236   :  { %v1312_v0 = vpop.f32.mrb[16].mxu0 }
 0x237   :  { %v1313_v9 = vpop.f32.mrb[17].mxu0 }
 0x238   :  { %v1314_v37 = vadd.f32 %v1313_v9, %v1312_v0  ;;  %v1315_v49 = vpop.f32.mrb[18].mxu0 }
 0x239   :  { %v1316_v2 = vpop.f32.mrb[19].mxu0 }
 0x23a   :  { %v1110_v12 = vadd.f32 %v1314_v37, %v2098_v1  ;;  %v1317_v14 = vadd.f32 %v1316_v2, %v1315_v49 }
 0x23c   :  { %1161 = vst [vmem:[#allocation11] sm:$0xff] %v1110_v12  ;;  %v1111_v39 = vadd.f32 %v1317_v14, %v2098_v1 }
 0x23e   :  { %1162 = vst [vmem:[#allocation11 + $0x8] sm:$0xff] %v1111_v39 }
 0x24a   :  { %v1318_v17 = vpop.f32.mrb[20].mxu0 }
 0x24b   :  { %v1319_v15 = vpop.f32.mrb[21].mxu0 }
 0x24c   :  { %v1320_v35 = vadd.f32 %v1319_v15, %v1318_v17  ;;  %v1321_v28 = vpop.f32.mrb[22].mxu0 }
 0x24d   :  { %v1322_v29 = vpop.f32.mrb[23].mxu0 }
 0x24e   :  { %v1112_v34 = vadd.f32 %v1320_v35, %v2098_v1  ;;  %v1323_v38 = vadd.f32 %v1322_v29, %v1321_v28 }
 0x250   :  { %1163 = vst [vmem:[#allocation11 + $0x10] sm:$0xff] %v1112_v34  ;;  %v1113_v51 = vadd.f32 %v1323_v38, %v2098_v1 }
 0x252   :  { %1164 = vst [vmem:[#allocation11 + $0x18] sm:$0xff] %v1113_v51  ;;  %v1324_v31 = vpop.f32.mrb[24].mxu0 }
 0x253   :  { %v1325_v50 = vpop.f32.mrb[25].mxu0 }
 0x254   :  { %v1326_v43 = vadd.f32 %v1325_v50, %v1324_v31  ;;  %v1327_v18 = vpop.f32.mrb[26].mxu0 }
 0x255   :  { %v1328_v45 = vpop.f32.mrb[27].mxu0 }
 0x256   :  { %v1114_v21 = vadd.f32 %v1326_v43, %v2098_v1  ;;  %v1329_v26 = vadd.f32 %v1328_v45, %v1327_v18 }
 0x258   :  { %1165 = vst [vmem:[#allocation11 + $0x20] sm:$0xff] %v1114_v21  ;;  %v1115_v63 = vadd.f32 %v1329_v26, %v2098_v1 }
 0x25a   :  { %1166 = vst [vmem:[#allocation11 + $0x28] sm:$0xff] %v1115_v63 }
 0x267   :  { %v1330_v32 = vpop.f32.mrb[28].mxu0 }
 0x268   :  { %v1331_v48 = vpop.f32.mrb[29].mxu0 }
 0x269   :  { %v1332_v30 = vadd.f32 %v1331_v48, %v1330_v32  ;;  %v1333_v44 = vpop.f32.mrb[30].mxu0 }
 0x26a   :  { %v1334_v54 = vpop.f32.mrb[31].mxu0 }
 0x26b   :  { %v1116_v56 = vadd.f32 %v1332_v30, %v2098_v1  ;;  %v1335_v60 = vadd.f32 %v1334_v54, %v1333_v44 }
 0x26d   :  { %1167 = vst [vmem:[#allocation11 + $0x30] sm:$0xff] %v1116_v56  ;;  %v1117_v4 = vadd.f32 %v1335_v60, %v2098_v1 }
 0x26f   :  { %1168 = vst [vmem:[#allocation11 + $0x38] sm:$0xff] %v1117_v4  ;;  %v1336_v20 = vpop.f32.mrb[32].mxu0 }
 0x270   :  { %v1337_v57 = vpop.f32.mrb[33].mxu0 }
 0x271   :  { %v1338_v41 = vadd.f32 %v1337_v57, %v1336_v20  ;;  %v1339_v61 = vpop.f32.mrb[34].mxu0 }
 0x272   :  { %v1340_v59 = vpop.f32.mrb[35].mxu0 }
 0x273   :  { %v1118_v13 = vadd.f32 %v1338_v41, %v2098_v1  ;;  %v1341_v27 = vadd.f32 %v1340_v59, %v1339_v61 }
 0x275   :  { %1169 = vst [vmem:[#allocation11 + $0x40] sm:$0xff] %v1118_v13  ;;  %v1119_v36 = vadd.f32 %v1341_v27, %v2098_v1 }
 0x277   :  { %1170 = vst [vmem:[#allocation11 + $0x48] sm:$0xff] %v1119_v36  ;;  %v1342_v52 = vpop.f32.mrb[36].mxu0 }
 0x278   :  { %v1343_v19 = vpop.f32.mrb[37].mxu0 }
 0x279   :  { %v1344_v10 = vadd.f32 %v1343_v19, %v1342_v52  ;;  %v1345_v7 = vpop.f32.mrb[38].mxu0 }
 0x27a   :  { %v1346_v47 = vpop.f32.mrb[39].mxu0 }
 0x27b   :  { %v1120_v25 = vadd.f32 %v1344_v10, %v2098_v1  ;;  %v1347_v40 = vadd.f32 %v1346_v47, %v1345_v7 }
 0x27d   :  { %1171 = vst [vmem:[#allocation11 + $0x50] sm:$0xff] %v1120_v25  ;;  %v1121_v62 = vadd.f32 %v1347_v40, %v2098_v1 }
 0x27f   :  { %1172 = vst [vmem:[#allocation11 + $0x58] sm:$0xff] %v1121_v62  ;;  %v1348_v6 = vpop.f32.mrb[40].mxu0 }
 0x280   :  { %v1349_v42 = vpop.f32.mrb[41].mxu0 }
 0x281   :  { %v1350_v11 = vadd.f32 %v1349_v42, %v1348_v6  ;;  %v1351_v23 = vpop.f32.mrb[42].mxu0 }
 0x282   :  { %v1352_v58 = vpop.f32.mrb[43].mxu0 }
 0x283   :  { %v1122_v5 = vadd.f32 %v1350_v11, %v2098_v1  ;;  %v1353_v24 = vadd.f32 %v1352_v58, %v1351_v23 }
 0x285   :  { %1173 = vst [vmem:[#allocation11 + $0x60] sm:$0xff] %v1122_v5  ;;  %v1123_v3 = vadd.f32 %v1353_v24, %v2098_v1 }
 0x287   :  { %1174 = vst [vmem:[#allocation11 + $0x68] sm:$0xff] %v1123_v3  ;;  %v1354_v33 = vpop.f32.mrb[44].mxu0 }
 0x288   :  { %v1355_v46 = vpop.f32.mrb[45].mxu0 }
 0x289   :  { %v1356_v53 = vadd.f32 %v1355_v46, %v1354_v33  ;;  %v1357_v55 = vpop.f32.mrb[46].mxu0 }
 0x28a   :  { %v1358_v22 = vpop.f32.mrb[47].mxu0 }
 0x28b   :  { %v1124_v16 = vadd.f32 %v1356_v53, %v2098_v1  ;;  %v1359_v8 = vadd.f32 %v1358_v22, %v1357_v55 }
 0x28d   :  { %1175 = vst [vmem:[#allocation11 + $0x70] sm:$0xff] %v1124_v16  ;;  %v1125_v0 = vadd.f32 %v1359_v8, %v2098_v1 }
 0x28f   :  { %1176 = vst [vmem:[#allocation11 + $0x78] sm:$0xff] %v1125_v0 }
 0x290   :  { %1660 = shalt.err (!%p1657_p9)
}
 0x291   :  { %s1661_s8 = scalar_lea.hbm %s2137_s6, 2048 }
 0x292   :  { %p1662_p10 = scmp.ne.s32.totalorder %s2137_s6, %s1661_s8  ;;  %p1665_p11 = scmp.lt.u32.totalorder %s1661_s8, %s2137_s6 }
 0x294   :  { %p1667_p12 = pnand %p1665_p11, %p1662_p10 }
 0x296   :  { %1670 = shalt.err (!%p1667_p12)
}
 0x297   :  { %1188 = dma.vmem_to_hbm [thread:$0]  %s1183_s5, 2048, %s2137_s6, [#allocation7], %s1681_s23, %s1681_s23, %s1682_s24  }
 0x298   :  { %1675 = dma.done.wait [#allocation7], 2048  }
 0x299   :  { %1676 = vsyncadd [#allocation7], 4294965248 }
 0x29a   :  { %1192 = vsyncpa [#allocation6], 1 }
 0x29b   :  { %1193 = vsyncpa [#allocation9], 1 }
 0x29c   :  { %1194 = vsyncpa [#allocation7], 1 }

</bundles_post_ra>
